<compile_context>
chip_gen: v7x
topology: tpu7x:2x2x1
jax: 0.10.0
libtpu: 0.0.40
codegen_flags: <defaults>
</compile_context>

<pallas_src>
import functools

import jax
import jax.numpy as jnp
from jax.experimental import pallas as pl
from jax.experimental.pallas import tpu as pltpu

_LANE = 128
_SUB = 8


def _mse2d_kernel(x_ref, t_ref, o_ref, *, s_valid, s_padded):
    # x_ref: (1, C, TR, 128) logits block, native dtype
    # t_ref: (1, 1, TR, 128) target block, native dtype
    # o_ref: (1, 1, 8, 128)  f32 partial-sum tile for this grid step
    C = x_ref.shape[1]
    TR = x_ref.shape[2]

    t = t_ref[0, 0].astype(jnp.float32)                       # (TR, 128)

    if C == 2:
        # softmax(x)[1] == sigmoid(x1 - x0) == 0.5 * (1 + tanh((x1 - x0)/2)).
        x0 = x_ref[0, 0].astype(jnp.float32)
        x1 = x_ref[0, 1].astype(jnp.float32)
        prob1 = 0.5 * (jnp.tanh((x1 - x0) * 0.5) + 1.0)        # (TR, 128)
    else:
        x = x_ref[0].astype(jnp.float32)                       # (C, TR, 128)
        m = jnp.max(x, axis=0)                                 # (TR, 128)
        e = jnp.exp(x - m[None, :, :])
        denom = jnp.sum(e, axis=0)
        prob1 = e[1] * pl.reciprocal(denom, approx=True)

    diff = prob1 - t
    sq = diff * diff                                           # (TR, 128)

    if s_valid != s_padded:
        # Mask out the zero-padded tail of the flattened spatial axis.
        r = pl.program_id(1)
        row = jax.lax.broadcasted_iota(jnp.int32, (TR, _LANE), 0)
        lane = jax.lax.broadcasted_iota(jnp.int32, (TR, _LANE), 1)
        idx = (r * TR + row) * _LANE + lane
        sq = jnp.where(idx < s_valid, sq, 0.0)

    # Reduce only down to one (8, 128) vreg per step (cheap vreg adds, no
    # cross-lane reduction, no scalar read-modify-write).
    o_ref[0, 0] = jnp.sum(sq.reshape(TR // _SUB, _SUB, _LANE), axis=0)


def mse_2d(logits, target):
    """logits: (N, C, H, W); target: (N, 1, H, W) or (N, H, W). Scalar f32."""
    N, C, H, W = logits.shape
    assert C >= 2, "softmax(...)[:, 1] needs at least two channels"
    S = H * W
    assert target.size == N * S

    # Lane-dense layout: flatten spatial so the trailing axis is 128 lanes.
    R0 = pl.cdiv(S, _LANE)
    # Row tile: multiple of 8 sublanes, ~2 MiB of logits per block.
    bytes_per_row = C * _LANE * logits.dtype.itemsize
    TR = max(_SUB, min(pl.cdiv(R0, _SUB) * _SUB,
                       ((2 << 20) // bytes_per_row) // _SUB * _SUB))
    R = pl.cdiv(R0, TR) * TR
    S_pad = R * _LANE

    x = logits.reshape(N, C, S)
    t = target.reshape(N, 1, S)                 # native dtype, no wrapper cast
    if S_pad != S:
        x = jnp.pad(x, ((0, 0), (0, 0), (0, S_pad - S)))
        t = jnp.pad(t, ((0, 0), (0, 0), (0, S_pad - S)))
    x = x.reshape(N, C, R, _LANE)
    t = t.reshape(N, 1, R, _LANE)

    n_blocks = R // TR
    kernel = functools.partial(_mse2d_kernel, s_valid=S, s_padded=S_pad)

    partials = pl.pallas_call(
        kernel,
        out_shape=jax.ShapeDtypeStruct((N, n_blocks, _SUB, _LANE), jnp.float32),
        grid_spec=pltpu.PrefetchScalarGridSpec(
            num_scalar_prefetch=0,
            grid=(N, n_blocks),
            in_specs=[
                pl.BlockSpec((1, C, TR, _LANE), lambda n, r: (n, 0, r, 0)),
                pl.BlockSpec((1, 1, TR, _LANE), lambda n, r: (n, 0, r, 0)),
            ],
            out_specs=pl.BlockSpec((1, 1, _SUB, _LANE),
                                   lambda n, r: (n, r, 0, 0)),
        ),
        compiler_params=pltpu.CompilerParams(
            dimension_semantics=("parallel", "parallel"),
            vmem_limit_bytes=32 * 1024 * 1024,
        ),
    )(x, t)

    # Tiny final reduction + mean (true element count, not the padded one).
    return jnp.sum(partials) / jnp.float32(N * S)


def mse_2d_ref(logits, target):
    prob = jax.nn.softmax(logits.astype(jnp.float32), axis=1)[:, 1]
    t = target.reshape(prob.shape).astype(jnp.float32)
    return jnp.mean((prob - t) ** 2)


if __name__ == "__main__":
    key = jax.random.PRNGKey(0)
    k1, k2, k3 = jax.random.split(key, 3)

    # Binary-segmentation style logits (C == 2 fast path, padded+masked tail).
    N, C, H, W = 2, 2, 16, 16
    logits = jax.random.normal(k1, (N, C, H, W), dtype=jnp.float32)
    target = (jax.random.uniform(k2, (N, 1, H, W)) > 0.5).astype(jnp.float32)

    loss = mse_2d(logits, target)
    jax.block_until_ready(loss)
    ref = mse_2d_ref(logits, target)
    assert jnp.allclose(loss, ref, atol=1e-5, rtol=1e-5), (loss, ref)

    # Generic C path (softmax + approx EUP reciprocal -> looser tolerance).
    logits4 = jax.random.normal(k3, (N, 4, H, W), dtype=jnp.float32)
    loss4 = mse_2d(logits4, target)
    jax.block_until_ready(loss4)
    ref4 = mse_2d_ref(logits4, target)
    assert jnp.allclose(loss4, ref4, atol=2e-3, rtol=2e-3), (loss4, ref4)

    print("KERNEL_OK")
</pallas_src>

<mosaic_0001>
module attributes {stable_mosaic.version = 11 : i64} {
  func.func @_mse2d_kernel(%arg0: i32, %arg1: i32, %arg2: memref<1x2x8x128xf32, #tpu.memory_space<vmem>>, %arg3: memref<1x1x8x128xf32, #tpu.memory_space<vmem>>, %arg4: memref<1x1x8x128xf32, #tpu.memory_space<vmem>>) attributes {dimension_semantics = [#tpu.dimension_semantics<parallel>, #tpu.dimension_semantics<parallel>], iteration_bounds = array<i64: 2, 1>, scalar_prefetch = 0 : i64, scratch_operands = 0 : i64, tpu.core_type = #tpu.core_type<tc>, window_params = [{transform_indices = @transform_0, window_bounds = array<i64: 1, 2, 8, 128>}, {transform_indices = @transform_1, window_bounds = array<i64: 1, 1, 8, 128>}, {transform_indices = @transform_2, window_bounds = array<i64: 1, 1, 8, 128>}]} {
    %c0 = arith.constant 0 : index
    %c0_0 = arith.constant 0 : index
    %c0_1 = arith.constant 0 : index
    %c0_2 = arith.constant 0 : index
    %0 = vector.load %arg3[%c0, %c0_0, %c0_1, %c0_2] : memref<1x1x8x128xf32, #tpu.memory_space<vmem>>, vector<1x1x8x128xf32>
    %1 = vector.shape_cast %0 : vector<1x1x8x128xf32> to vector<8x128xf32>
    %c0_3 = arith.constant 0 : index
    %c0_4 = arith.constant 0 : index
    %c0_5 = arith.constant 0 : index
    %c0_6 = arith.constant 0 : index
    %2 = vector.load %arg2[%c0_3, %c0_4, %c0_5, %c0_6] : memref<1x2x8x128xf32, #tpu.memory_space<vmem>>, vector<1x1x8x128xf32>
    %3 = vector.shape_cast %2 : vector<1x1x8x128xf32> to vector<8x128xf32>
    %c0_7 = arith.constant 0 : index
    %c1 = arith.constant 1 : index
    %c0_8 = arith.constant 0 : index
    %c0_9 = arith.constant 0 : index
    %4 = vector.load %arg2[%c0_7, %c1, %c0_8, %c0_9] : memref<1x2x8x128xf32, #tpu.memory_space<vmem>>, vector<1x1x8x128xf32>
    %5 = vector.shape_cast %4 : vector<1x1x8x128xf32> to vector<8x128xf32>
    %6 = arith.subf %5, %3 : vector<8x128xf32>
    %cst = arith.constant 5.000000e-01 : f32
    %7 = vector.broadcast %cst : f32 to vector<8x128xf32>
    %8 = arith.mulf %6, %7 : vector<8x128xf32>
    %9 = math.tanh %8 : vector<8x128xf32>
    %cst_10 = arith.constant 1.000000e+00 : f32
    %10 = vector.broadcast %cst_10 : f32 to vector<8x128xf32>
    %11 = arith.addf %9, %10 : vector<8x128xf32>
    %cst_11 = arith.constant 5.000000e-01 : f32
    %12 = vector.broadcast %cst_11 : f32 to vector<8x128xf32>
    %13 = arith.mulf %12, %11 : vector<8x128xf32>
    %14 = arith.subf %13, %1 : vector<8x128xf32>
    %15 = arith.mulf %14, %14 : vector<8x128xf32>
    %16 = tpu.iota {dimensions = array<i32: 0>} : vector<8x128xi32>
    %17 = tpu.iota {dimensions = array<i32: 1>} : vector<8x128xi32>
    %c8_i32 = arith.constant 8 : i32
    %18 = arith.muli %arg1, %c8_i32 : i32
    %19 = vector.broadcast %18 : i32 to vector<8x128xi32>
    %20 = arith.addi %19, %16 : vector<8x128xi32>
    %c128_i32 = arith.constant 128 : i32
    %21 = vector.broadcast %c128_i32 : i32 to vector<8x128xi32>
    %22 = arith.muli %20, %21 : vector<8x128xi32>
    %23 = arith.addi %22, %17 : vector<8x128xi32>
    %c256_i32 = arith.constant 256 : i32
    %24 = vector.broadcast %c256_i32 : i32 to vector<8x128xi32>
    %25 = arith.cmpi slt, %23, %24 : vector<8x128xi32>
    %cst_12 = arith.constant 0.000000e+00 : f32
    %26 = vector.broadcast %cst_12 : f32 to vector<8x128xf32>
    %27 = arith.select %25, %15, %26 : vector<8x128xi1>, vector<8x128xf32>
    %28 = vector.shape_cast %27 : vector<8x128xf32> to vector<1x8x128xf32>
    %cst_13 = arith.constant dense<0.000000e+00> : vector<8x128xf32>
    %29 = vector.multi_reduction <add>, %28, %cst_13 [0] : vector<1x8x128xf32> to vector<8x128xf32>
    %c0_14 = arith.constant 0 : index
    %c0_15 = arith.constant 0 : index
    %c0_16 = arith.constant 0 : index
    %c0_17 = arith.constant 0 : index
    %30 = vector.load %arg4[%c0_14, %c0_15, %c0_16, %c0_17] : memref<1x1x8x128xf32, #tpu.memory_space<vmem>>, vector<1x1x8x128xf32>
    %31 = vector.shape_cast %30 : vector<1x1x8x128xf32> to vector<8x128xf32>
    %32 = vector.shape_cast %29 : vector<8x128xf32> to vector<1x1x8x128xf32>
    tpu.vector_store %arg4[%c0_14, %c0_15, %c0_16, %c0_17], %32 {strides = array<i32>} : memref<1x1x8x128xf32, #tpu.memory_space<vmem>>, vector<1x1x8x128xf32>,
    return
  }
  func.func @transform_0(%arg0: i32, %arg1: i32) -> (i32, i32, i32, i32) {
    %c0_i32 = arith.constant 0 : i32
    %c0_i32_0 = arith.constant 0 : i32
    %c0_i32_1 = arith.constant 0 : i32
    return %arg0, %c0_i32, %arg1, %c0_i32_0 : i32, i32, i32, i32
  }
  func.func @transform_1(%arg0: i32, %arg1: i32) -> (i32, i32, i32, i32) {
    %c0_i32 = arith.constant 0 : i32
    %c0_i32_0 = arith.constant 0 : i32
    %c0_i32_1 = arith.constant 0 : i32
    return %arg0, %c0_i32, %arg1, %c0_i32_0 : i32, i32, i32, i32
  }
  func.func @transform_2(%arg0: i32, %arg1: i32) -> (i32, i32, i32, i32) {
    %c0_i32 = arith.constant 0 : i32
    %c0_i32_0 = arith.constant 0 : i32
    %c0_i32_1 = arith.constant 0 : i32
    return %arg0, %arg1, %c0_i32, %c0_i32_0 : i32, i32, i32, i32
  }
}

</mosaic_0001>

<bundles_post_ra>
// kernel: tpu_custom_call.1
= control target key start
LH: loop header
LB: loop body
LE: loop exit
PB: predicated region body
PF: predicated region fallthrough
CT: control target
= control target key end

     0   :  { %7 = vsyncpa [#allocation3], 0  ;;  %s836_s0 = inlined_call_operand.hbm [shape: f32[2,2,8,128], index: 0, kind: input, shape index: {}]   ;;  %s837_s1 = inlined_call_operand.hbm [shape: f32[2,1,8,128], index: 1, kind: input, shape index: {}]   ;;  %s838_s2 = inlined_call_operand.hbm [shape: f32[2,1,8,128], index: 2, kind: output, shape index: {}]  }
   0x1   :  { %9 = vsyncpa [#allocation3 + $0x1], 0 }
   0x2   :  { %10 = vsyncpa [#allocation6], 0 }
   0x3   :  { %12 = vsyncpa [#allocation6 + $0x1], 0 }
   0x4   :  { %13 = vsyncpa [#allocation4], 0 }
   0x5   :  { %15 = vsyncpa [#allocation4 + $0x1], 0  ;;  %s621_s9 = smov 0   ;;  %s623_s10 = smov 0  }
   0x6   :  { %s625_s11 = smov 0   ;;  %s627_s12 = smov 0  }
   0x7   :  { %s629_s13 = smov 0   ;;  %s631_s14 = smov 0  }
   0x8 LB: > { %s363_s15 = sadd.s32 4294967295, %s599_s14   ;;  %s364_s16 = sadd.s32 4294967294, %s599_s14   ;;  %s599_s14 = sphi %s631_s14, %s21_s14   ;;  %s595_s13 = sphi %s629_s13, %s857_s13   ;;  %s591_s12 = sphi %s627_s12, %s856_s12   ;;  %s587_s11 = sphi %s625_s11, %s855_s11   ;;  %s583_s10 = sphi %s623_s10, %s854_s10   ;;  %s579_s9 = sphi %s621_s9, %s853_s9  }
   0x9   : > { %s33_s17 = sadd.s32 1, %s595_s13  ;;  %s42_s18 = sadd.s32 1, %s587_s11 }
   0xa   : > { %p35_p0 = scmp.ge.s32.totalorder %s33_s17, 2  ;;  %p49_p1 = scmp.ne.s32.totalorder %s587_s11, %s583_s10 }
   0xb   : > { %p50_p2 = scmp.eq.s32.totalorder %s599_s14, 0  ;;  %p55_p3 = scmp.ne.s32.totalorder %s583_s10, %s579_s9 }
   0xc   : > { %s859_s17 = smov (%p35_p0, %s33_s17), 0  ;;  %p56_p5 = scmp.eq.s32.totalorder %s363_s15, 0 }
   0xd   : > { %p662_p4 = por %p50_p2, %p49_p1  ;;  %s37_s20 = ssub.s32 %s595_s13, %s859_s17 }
   0xe   : > { %p109_p6 = scmp.eq.s32.totalorder %s363_s15, 1  ;;  %p40_p7 = scmp.eq.s32.totalorder %s37_s20, 0 }
   0xf   : > { %p668_p8 = por %p56_p5, %p55_p3  ;;  %p115_p10 = scmp.eq.s32.totalorder %s364_s16, 1 }
  0x10   : > { %p672_p9 = por %p109_p6, %p49_p1  ;;  %p399_p13 = scmp.lt.s32.totalorder %s599_s14, 2 }
  0x11   : > { %s842_s21 = scalar_select %p668_p8, 1, 0 }
  0x12   : > { %s843_s22 = scalar_select %p672_p9, 1, 0 }
  0x13   : > { %s677_s23 = scalar_select %p40_p7, %s587_s11, %s42_s18  }
  0x14   : > { %p679_p11 = por %p115_p10, %p55_p3  ;;  %s686_s25 = sand.u32 1, %s587_s11  }
  0x15   : > { %s367_s26 = sshll.u32 %s686_s25, 4  ;;  %s381_s27 = sshll.u32 %s595_s13, 8 }
  0x16   : > { %s844_s24 = scalar_select %p679_p11, 1, 0 }
  0x17   : > { %s693_s30 = scalar_lea.hbm %s836_s0, %s381_s27  ;;  %s139_s3 = scalar_lea.vmem [#allocation2], %s367_s26 }
  0x18   : > { %s147_s4 = sshll.u32 %s139_s3, 4  ;;  %p699_p0 = pnand %p399_p13, %p662_p4  ;;  %s695_s4 = int_to_ptr.vmem [resolvable:$true] %s147_s4 }
  0x19   : > { %s136_s6 = scalar_lea.sflag [#allocation3], %s686_s25  ;;  %s453_s7 = scalar_lea.hbm %s693_s30, 256 }
  0x1a   : > { %p454_p2 = scmp.ne.s32.totalorder %s693_s30, %s453_s7  ;;  %p455_p3 = pneg %p699_p0 }
  0x1b   : > { %s458_s16 = scalar_lea.hbm %s836_s0, 512  ;;  %p459_p4 = scmp.lt.u32.totalorder %s693_s30, %s836_s0 }
  0x1c   : > { %p456_p5 = pnand %p455_p3, %p454_p2  ;;  %p460_p7 = scmp.lt.u32.totalorder %s458_s16, %s453_s7 }
  0x1d   : > { %p462_p13 = scmp.lt.u32.totalorder %s453_s7, %s693_s30 }
  0x1e   : > { %p457_p6 = pneg %p456_p5  ;;  %p461_p10 = por %p460_p7, %p459_p4 }
  0x20   : > { %p463_p12 = por %p462_p13, %p461_p10 }
  0x22   : > { %p464_p1 = pnand %p463_p12, %p457_p6 }
  0x24   : > { %467 = shalt.err (!%p464_p1)
}
  0x25   : > { %s468_s20 = scalar_lea.vmem %s695_s4, 256  ;;  %s601_s26 = smov [#allocation2]  }
  0x26   : > { %p469_p2 = scmp.ne.s32.totalorder %s695_s4, %s468_s20  ;;  %s473_s27 = sshll.u32 %s601_s26, 4  ;;  %s474_s27 = int_to_ptr.vmem [resolvable:$false] %s473_s27 }
  0x27   : > { %s475_s28 = scalar_lea.vmem %s474_s27, 512  ;;  %p476_p9 = scmp.lt.s32.totalorder %s695_s4, %s474_s27 }
  0x28   : > { %p471_p5 = pnand %p469_p2, %p455_p3  ;;  %p477_p4 = scmp.lt.s32.totalorder %s475_s28, %s468_s20 }
  0x2a   : > { %p472_p11 = pneg %p471_p5  ;;  %p478_p7 = por %p477_p4, %p476_p9 }
  0x2c   : > { %p479_p10 = pnand %p478_p7, %p472_p11 }
  0x2e   : > { %482 = shalt.err (!%p479_p10)
}
  0x2f   : > { %s602_s29 = smov 128   ;;  %s603_s3 = smov 8  }
  0x30   : > { %391 = dma.hbm_to_vmem [thread:$0]  (!%p699_p0), %s693_s30, 256, %s695_s4, %s136_s6, %s602_s29, %s602_s29, %s603_s3  }
  0x31   : > { %p174_p12 = scmp.lt.s32.totalorder %s599_s14, 3  ;;  %s370_s7 = sshll.u32 %s686_s25, 3 }
  0x32   : > { %s371_s8 = sshll.u32 %s595_s13, 7  ;;  %p846_p9 = scmp.ge.s32.totalorder %s599_s14, 1 }
  0x33   : > { %s744_s19 = scalar_lea.hbm %s837_s1, %s371_s8  ;;  %s161_s20 = scalar_lea.vmem [#allocation5], %s370_s7 }
  0x34   : > { %p737_p11 = pnand %p846_p9, %p174_p12  ;;  %s169_s26 = sshll.u32 %s161_s20, 4  ;;  %s170_s26 = int_to_ptr.vmem [resolvable:$true] %s169_s26 }
  0x35   : > { %s158_s30 = scalar_lea.sflag [#allocation6], %s686_s25  ;;  %s483_s4 = scalar_lea.hbm %s744_s19, 128 }
  0x36   : > { %s847_s15 = scalar_select %p737_p11, 1, 0 }
  0x37   : > { %p484_p1 = scmp.ne.s32.totalorder %s744_s19, %s483_s4  ;;  %s488_s28 = scalar_lea.hbm %s837_s1, 256 }
  0x38   : > { %p489_p2 = scmp.lt.u32.totalorder %s744_s19, %s837_s1  ;;  %p490_p5 = scmp.lt.u32.totalorder %s488_s28, %s483_s4 }
  0x39   : > { %p486_p6 = pnand %p484_p1, %p455_p3  ;;  %p492_p7 = scmp.lt.u32.totalorder %s483_s4, %s744_s19 }
  0x3a   : > { %p491_p4 = por %p490_p5, %p489_p2 }
  0x3b   : > { %p487_p13 = pneg %p486_p6 }
  0x3c   : > { %p493_p10 = por %p492_p7, %p491_p4 }
  0x3e   : > { %p494_p12 = pnand %p493_p10, %p487_p13 }
  0x40   : > { %497 = shalt.err (!%p494_p12)
}
  0x41   : > { %s498_s25 = scalar_lea.vmem %s170_s26, 128  ;;  %s604_s7 = smov [#allocation5]  }
  0x42   : > { %p499_p9 = scmp.ne.s32.totalorder %s170_s26, %s498_s25  ;;  %s503_s8 = sshll.u32 %s604_s7, 4  ;;  %s504_s8 = int_to_ptr.vmem [resolvable:$false] %s503_s8 }
  0x43   : > { %s505_s16 = scalar_lea.vmem %s504_s8, 256  ;;  %p506_p8 = scmp.lt.s32.totalorder %s170_s26, %s504_s8 }
  0x44   : > { %p501_p1 = pnand %p499_p9, %p455_p3  ;;  %p507_p11 = scmp.lt.s32.totalorder %s505_s16, %s498_s25 }
  0x46   : > { %p502_p6 = pneg %p501_p1  ;;  %p508_p2 = por %p507_p11, %p506_p8 }
  0x48   : > { %p509_p5 = pnand %p508_p2, %p502_p6 }
  0x4a   : > { %512 = shalt.err (!%p509_p5)
}
  0x4b   : > { %394 = dma.hbm_to_vmem [thread:$0]  (!%p699_p0), %s744_s19, 128, %s170_s26, %s158_s30  }
  0x4c   : > { %p848_p13 = scmp.ne.s32.totalorder %s847_s15, 0 }
  0x4d   : > { %s769_s18 = sand.u32 (!%p848_p13), 1, %s583_s10   ;;  %p849_p3 = scmp.ne.s32.totalorder (!%p848_p13), %s842_s21, 0 }
  0x4e   : > { %178 = sbr.rel (%p848_p13) target bundleno = 128 (0x80), region = 28  ;;  %s373_s20 = sshll.u32 (!%p848_p13), %s769_s18, 4 }
  0x4f   : > { %s181_s4 = scalar_lea.sflag (!%p848_p13), [#allocation3], %s769_s18  ;;  %s184_s6 = scalar_lea.vmem (!%p848_p13), [#allocation2], %s373_s20 }
  0x55   : > { %566 = dma.done.wait (%p849_p3), %s181_s4, 256  }
  0x56   : > { %568 = vsyncadd (%p849_p3), %s181_s4, 4294967040  ;;  %s374_s5 = sshll.u32 %s769_s18, 3  ;;  %s190_s15 = scalar_lea.sflag [#allocation6], %s769_s18 }
  0x57   : > { %s193_s19 = scalar_lea.vmem [#allocation5], %s374_s5 }
  0x58   : > { %570 = dma.done.wait (%p849_p3), %s190_s15, 128  }
  0x59   : > { %572 = vsyncadd (%p849_p3), %s190_s15, 4294967168  ;;  %v220_v0 = vld [vmem:[%s184_s6] sm:$0xff]  ;;  %v376_v1 = vld [vmem:[%s184_s6 + $0x8] sm:$0xff]  ;;  %v230_v4 = vlaneseq  ;;  %s218_s21 = scalar_lea.vmem [#allocation7], %s374_s5  ;;  %s378_s30 = sshll.u32 %s591_s12, 7 }
  0x5a   : > { %v223_v2 = vsub.f32 %v376_v1, %v220_v0  ;;  %v219_v10 = vld [vmem:[%s193_s19] sm:$0xff]  ;;  %s258_s26 = sshll.u32 %s218_s21, 4  ;;  %s789_s29 = scalar_lea.hbm %s838_s2, %s378_s30  ;;  %s784_s26 = int_to_ptr.vmem [resolvable:$true] %s258_s26 }
  0x5b   : > { %v231_v5 = vshrl.u32 %v230_v4, 7  ;;  %v233_v6 = vand.u32 127, %v230_v4  ;;  %s244_s3 = scalar_lea.sflag [#allocation4], %s769_s18  ;;  %s513_s25 = scalar_lea.vmem %s784_s26, 128 }
  0x5c   : > { %v224_v3 = vmul.f32 0.5, %v223_v2  ;;  %p514_p8 = scmp.ne.s32.totalorder %s784_s26, %s513_s25  ;;  %p850_p0 = scmp.ne.s32.totalorder %s843_s22, 0 }
  0x5d   : > { %v237_v7 = vmul.u32 128, %v231_v5  ;;  %s605_s12 = smov [#allocation7]  }
  0x5e   : > { %451 = vtanh.f32 %v224_v3  ;;  %p515_p11 = pnand %p514_p8, %p850_p0  ;;  %s517_s7 = sshll.u32 %s605_s12, 4  ;;  %s518_s7 = int_to_ptr.vmem [resolvable:$false] %s517_s7 }
  0x5f   : > { %v238_v11 = vadd.s32 %v237_v7, %v233_v6  ;;  %s519_s8 = scalar_lea.vmem %s518_s7, 256  ;;  %p520_p7 = scmp.lt.s32.totalorder %s784_s26, %s518_s7 }
  0x60   : > { %p516_p4 = pneg %p515_p11  ;;  %p521_p10 = scmp.lt.s32.totalorder %s519_s8, %s513_s25 }
  0x61   : > { %vm239_vm0 = vcmp.lt.s32.totalorder %v238_v11, 256 }
  0x62   : > { %p522_p12 = por %p521_p10, %p520_p7 }
  0x64   : > { %p523_p9 = pnand %p522_p12, %p516_p4 }
  0x68   : > { %v452_v8 = vpop.eup %451 }
  0x69   : > { %v226_v9 = vadd.f32 1.0, %v452_v8 }
  0x6b   : > { %v227_v12 = vmul.f32 0.5, %v226_v9 }
  0x6d   : > { %v228_v13 = vsub.f32 %v227_v12, %v219_v10 }
  0x6f   : > { %v229_v14 = vmul.f32 %v228_v13, %v228_v13 }
  0x71   : > { %v240_v15 = vsel %vm239_vm0, %v229_v14, 0.0 }
  0x72   : > { %242 = vst [vmem:[%s218_s21] sm:$0xff] %v240_v15 }
  0x73   : > { %526 = shalt.err (!%p523_p9)
}
  0x74   : > { %s527_s16 = scalar_lea.hbm %s789_s29, 128  ;;  %s531_s4 = scalar_lea.hbm %s838_s2, 256 }
  0x75   : > { %p528_p1 = scmp.ne.s32.totalorder %s789_s29, %s527_s16  ;;  %p532_p5 = scmp.lt.u32.totalorder %s789_s29, %s838_s2 }
  0x76   : > { %p533_p13 = scmp.lt.u32.totalorder %s531_s4, %s527_s16  ;;  %p535_p8 = scmp.lt.u32.totalorder %s527_s16, %s789_s29 }
  0x77   : > { %p529_p6 = pnand %p528_p1, %p850_p0 }
  0x78   : > { %p534_p3 = por %p533_p13, %p532_p5 }
  0x79   : > { %p530_p2 = pneg %p529_p6 }
  0x7a   : > { %p536_p11 = por %p535_p8, %p534_p3 }
  0x7c   : > { %p537_p4 = pnand %p536_p11, %p530_p2 }
  0x7e   : > { %540 = shalt.err (!%p537_p4)
}
  0x7f   : > { %386 = dma.vmem_to_hbm [thread:$0]  (%p850_p0), %s784_s26, 128, %s789_s29, %s244_s3  }
  0x80 PF: > { %s270_s15 = sand.u32 1, %s579_s9   ;;  %p851_p7 = scmp.ne.s32.totalorder %s844_s24, 0 }
  0x81   : > { %p852_p10 = scmp.ge.s32.totalorder %s599_s14, 2  ;;  %s271_s19 = scalar_lea.sflag [#allocation4], %s270_s15 }
  0x83   : > { %p396_p12 = pnand %p852_p10, %p851_p7 }
  0x85   : > { %574 = dma.done.wait (!%p396_p12), %s271_s19, 128  }
  0x86   : > { %576 = vsyncadd (!%p396_p12), %s271_s19, 4294967168  ;;  %s21_s14 = sadd.s32 1, %s599_s14   ;;  %s853_s9 = smov %s583_s10 }
  0x87   : > { %p18_p9 = scmp.ge.s32.totalorder %s21_s14, 4   ;;  %s854_s10 = smov %s587_s11 }
  0x88   : > { %s855_s11 = smov %s677_s23  ;;  %s856_s12 = smov %s595_s13 }
  0x89   : > { %s857_s13 = smov %s859_s17  ;;  %20 = sbr.rel (!%p18_p9) target bundleno = 8 (0x8), region = 87 }
  0x90   :  { %276 = vsyncpa [#allocation3], 1 }
  0x91   :  { %278 = vsyncpa [#allocation3 + $0x1], 1 }
  0x92   :  { %279 = vsyncpa [#allocation6], 1 }
  0x93   :  { %281 = vsyncpa [#allocation6 + $0x1], 1 }
  0x94   :  { %282 = vsyncpa [#allocation4], 1 }
  0x95   :  { %284 = vsyncpa [#allocation4 + $0x1], 1 }

</bundles_post_ra>
